<compile_context>
chip_gen: v7x
topology: tpu7x:2x2x1
jax: 0.10.0
libtpu: 0.0.40
codegen_flags: <defaults>
</compile_context>

<pallas_src>
import math
from functools import partial

import jax
import jax.numpy as jnp
from jax import lax
from jax.experimental import pallas as pl
from jax.experimental.pallas import tpu as pltpu


def _vmem_limit_bytes():
    """Generation-aware VMEM budget: ~3/4 of physical, capped with headroom."""
    cap = 64 * 1024 * 1024          # conservative fallback (works on every part)
    try:
        cap = int(pltpu.get_tpu_info().vmem_capacity_bytes)
    except Exception:
        pass
    return int(min(cap * 3 // 4, 112 * 1024 * 1024))


def _pick_batch_block(B):
    """Largest divisor of B <= 8 that keeps >= 2 grid steps (v7x has 2 TCs)."""
    for cand in range(min(8, B), 0, -1):
        if B % cand == 0 and (B // cand >= 2 or B == 1):
            return cand
    return 1


def _prob_qk_sample_kernel(q_ref, k_ref, cnt_ref, m_ref, *, H, D, BB):
    """M[h, q] = max_s(QK_sample) - sum_s(QK_sample)/L_K for all H heads, BB batches.

    q_ref:   (BB, L_Q, H*D)   input dtype (e.g. bf16)
    k_ref:   (BB, L_K, H*D)
    cnt_ref: (L_K, H*L_Q)     f32 sample multiplicity counts (resident, shared b/h)
    m_ref:   (BB, 1, H*L_Q)   f32 (lane-dense; reshaped to (B, H, L_Q) in wrapper)
    """
    L_Q, HD = q_ref.shape[1], q_ref.shape[2]
    L_K = k_ref.shape[1]
    dtype = q_ref.dtype

    cnt = cnt_ref[...]                                   # (L_K, H*L_Q) f32
    sample_mask = cnt > 0.0
    inv_lk = 1.0 / L_K

    # Per-head 0/1 lane masks in the input dtype, hoisted out of the batch loop.
    col = lax.broadcasted_iota(jnp.int32, (L_Q, HD), 1)
    col_masks = [jnp.logical_and(col >= h * D, col < (h + 1) * D).astype(dtype)
                 for h in range(H)]

    for bb in range(BB):
        q = q_ref[bb]                                    # (L_Q, HD)
        k = k_ref[bb]                                    # (L_K, HD)
        # Head-stacked, lane-masked Q: row block h holds q with only head-h lanes
        # non-zero, so ONE NT matmul yields every head's sampled-score tile while
        # the MXU contracts over the full 128 lanes (N = H*L_Q = 256 fills the
        # 256-wide MXU on v6e/v7x).
        qcat = jnp.concatenate([q * col_masks[h] for h in range(H)], axis=0)
        s_t = lax.dot_general(k, qcat, (((1,), (1,)), ((), ())),
                              preferred_element_type=jnp.float32)   # (L_K, H*L_Q)
        smax = jnp.max(jnp.where(sample_mask, s_t, -jnp.inf),
                       axis=0, keepdims=True)                       # (1, H*L_Q)
        ssum = jnp.sum(s_t * cnt, axis=0, keepdims=True) * inv_lk   # (1, H*L_Q)
        m_ref[bb] = smax - ssum                                     # lane-dense store


def _sparse_update_kernel(q_ref, k_ref, v_ref, idx_row_ref, idx_col_ref, out_ref,
                          *, H, D, u, scale, BB, approx_recip):
    """Selected-query scores, ProbMask, softmax, attn@V, causal-cumsum context and
    row scatter — head-stacked, for BB batches; lane-dense (L_Q, H*D) output.

    q_ref/k_ref/v_ref: (BB, L, H*D)
    idx_row_ref: (BB, 1, H*u) int32  (stacked as r = h*u + j)
    idx_col_ref: (BB, H*u, 1) int32  (same values, column layout)
    out_ref:     (BB, L_Q, H*D)
    """
    L_Q, HD = out_ref.shape[1], out_ref.shape[2]
    L_K = k_ref.shape[1]
    HU = H * u
    dtype = v_ref.dtype

    # ---- constants hoisted out of the batch loop; all generated in-kernel from
    # iota compares (no resident (L, L) inputs -> residents stay small on v7x) ----
    rq = lax.broadcasted_iota(jnp.int32, (L_Q, L_K), 0)
    ck = lax.broadcasted_iota(jnp.int32, (L_Q, L_K), 1)
    tri = (ck <= rq).astype(dtype)                       # causal lower-tri ones

    # Head-group mask over the stacked (H*u, H*D) layout, built with threshold sums
    # (avoids int division by the non-power-of-2 u).
    rr = lax.broadcasted_iota(jnp.int32, (HU, HD), 0)
    cc = lax.broadcasted_iota(jnp.int32, (HU, HD), 1)
    row_head = jnp.zeros((HU, HD), jnp.int32)
    col_head = jnp.zeros((HU, HD), jnp.int32)
    for h in range(1, H):
        row_head = row_head + (rr >= h * u).astype(jnp.int32)
        col_head = col_head + (cc >= h * D).astype(jnp.int32)
    head_mask_f = (row_head == col_head).astype(jnp.float32)   # (HU, HD)
    head_mask_d = head_mask_f.astype(dtype)

    qpos = lax.broadcasted_iota(jnp.int32, (L_Q, HU), 0)   # query pos (scatter 1-hot)
    gpos = lax.broadcasted_iota(jnp.int32, (HU, L_Q), 1)   # query pos (gather 1-hot)
    kpos = lax.broadcasted_iota(jnp.int32, (HU, L_K), 1)   # key pos   (ProbMask)

    for bb in range(BB):
        q = q_ref[bb]                    # (L_Q, HD)
        k = k_ref[bb]                    # (L_K, HD)
        v = v_ref[bb]                    # (L_V, HD)
        idx_row = idx_row_ref[bb]        # (1, HU)
        idx_col = idx_col_ref[bb]        # (HU, 1)

        # Initial context (mask_flag=True): causal cumulative sum of V for all
        # heads in one lane-dense MXU matmul, accumulated in f32.
        ctx = lax.dot_general(tri, v, (((1,), (0,)), ((), ())),
                              preferred_element_type=jnp.float32)      # (L_Q, HD)

        # Gather the selected query rows for all heads with ONE one-hot matmul
        # (exact row copies; reuses the Q tile already resident in VMEM — no
        # wrapper gather / extra (B,H,u,HD) HBM tensor).
        oh_g = (gpos == idx_col).astype(dtype)                         # (HU, L_Q)
        qg = lax.dot_general(oh_g, q, (((1,), (0,)), ((), ())),
                             preferred_element_type=jnp.float32)       # (HU, HD)
        qcat = qg.astype(dtype) * head_mask_d                          # lane-masked

        # scores_top = (Q_reduce @ K^T) * scale for all heads at once; non-head
        # lanes of qcat are zero so each stacked row only sees its own head.
        scores = lax.dot_general(qcat, k, (((1,), (1,)), ((), ())),
                                 preferred_element_type=jnp.float32) * scale

        # ProbMask: key positions strictly greater than the original query position.
        scores = jnp.where(kpos > idx_col, -jnp.inf, scores)

        # Softmax over keys in f32; approx reciprocal runs on the EUP slot
        # (~1e-3 rel. error vs. exact divide — gated by approx_recip).
        smax = jnp.max(scores, axis=-1, keepdims=True)
        p = jnp.exp(scores - smax)
        psum = jnp.sum(p, axis=-1, keepdims=True)
        if approx_recip:
            attn = p * pl.reciprocal(psum, approx=True)
        else:
            attn = p / psum

        # attn @ V for all heads (f32 accumulate).
        out_top = lax.dot_general(attn.astype(dtype), v, (((1,), (0,)), ((), ())),
                                  preferred_element_type=jnp.float32)  # (HU, HD)

        # Scatter updated rows back to their original query positions. The scatter
        # path stays in f32 (no intermediate bf16 rounding); top-k indices are
        # distinct per head, so the one-hot matmul is exact row replacement.
        out_masked = out_top * head_mask_f                              # (HU, HD) f32
        oh_s = (qpos == idx_row).astype(jnp.float32)                    # (L_Q, HU)
        scat = lax.dot_general(oh_s, out_masked, (((1,), (0,)), ((), ())),
                               preferred_element_type=jnp.float32)      # (L_Q, HD)
        sel = lax.dot_general(oh_s, head_mask_f, (((1,), (0,)), ((), ())),
                              preferred_element_type=jnp.float32) > 0.5  # (L_Q, HD)
        ctx = jnp.where(sel, scat, ctx)

        out_ref[bb] = ctx.astype(out_ref.dtype)                         # lane-dense


def prob_attention(queries, keys, values, attn_mask=None, *, factor=5, scale=None,
                   sample_key=None, approx_reciprocal=True):
    """mask_flag=True / output_attention=False path of ProbAttention.forward.

    queries/keys/values: (B, L, H, D) in the caller's dtype (bf16 feeds the MXU
    directly; accumulation is f32). Returns (context (B, L_Q, H, D), None).
    """
    del attn_mask  # mask_flag=True rebuilds the ProbMask internally (as in PyTorch)
    if sample_key is None:
        sample_key = jax.random.PRNGKey(1)

    B, L_Q, H, D = queries.shape
    _, L_K, _, _ = keys.shape
    assert L_Q == L_K, "mask_flag=True path requires L_Q == L_K (cumsum context)"
    # TODO(synk): mask_flag=False (mean initial context, no ProbMask) and
    # output_attention=True branches are not implemented (module defaults used).

    dtype = values.dtype
    HD = H * D
    HLQ = H * L_Q

    # (B, L, H, D) -> (B, L, H*D): pure reshape, no transpose / HBM round trip.
    q2d = queries.reshape(B, L_Q, HD)
    k2d = keys.reshape(B, L_K, HD)
    v2d = values.reshape(B, L_K, HD)

    U_part = min(factor * int(math.ceil(math.log(L_K))), L_K)   # sample_k
    u = min(factor * int(math.ceil(math.log(L_Q))), L_Q)        # n_top
    HU = H * u

    # Random key sampling (shared across B and H, as in the reference), expressed
    # as a per-query multiplicity-count matrix built with scatter-add (f32, exact
    # counts), tiled across heads so kernel A's reductions run over the
    # head-stacked 256-wide columns.
    index_sample = jax.random.randint(sample_key, (L_Q, U_part), 0, L_K)
    qpos = jnp.broadcast_to(jnp.arange(L_Q, dtype=jnp.int32)[:, None],
                            (L_Q, U_part))
    cnt = jnp.zeros((L_K, L_Q), jnp.float32).at[index_sample, qpos].add(1.0)
    cnt_wide = jnp.tile(cnt, (1, H))                             # (L_K, H*L_Q)

    BB = _pick_batch_block(B)
    grid = (B // BB,)
    cparams = pltpu.CompilerParams(
        dimension_semantics=("parallel",),
        vmem_limit_bytes=_vmem_limit_bytes(),
    )

    # ---- kernel A: sparsity measure M per (b, h, query), lane-dense output -----
    m = pl.pallas_call(
        partial(_prob_qk_sample_kernel, H=H, D=D, BB=BB),
        out_shape=jax.ShapeDtypeStruct((B, 1, HLQ), jnp.float32),
        grid=grid,
        in_specs=[
            pl.BlockSpec((BB, L_Q, HD), lambda b: (b, 0, 0)),
            pl.BlockSpec((BB, L_K, HD), lambda b: (b, 0, 0)),
            pl.BlockSpec((L_K, HLQ), lambda b: (0, 0)),          # resident across grid
        ],
        out_specs=pl.BlockSpec((BB, 1, HLQ), lambda b: (b, 0, 0)),
        compiler_params=cparams,
    )(q2d, k2d, cnt_wide)

    # top-u queries per (b, h) (tiny sort; plain JAX glue between the two kernels)
    m = m.reshape(B, H, L_Q)
    _, idx = lax.top_k(m, u)                                     # (B, H, u)
    idx = idx.astype(jnp.int32).reshape(B, HU)                   # stacked r = h*u + j
    idx_row = idx.reshape(B, 1, HU)
    idx_col = idx.reshape(B, HU, 1)

    scale_val = float(scale) if scale is not None else 1.0 / math.sqrt(D)

    # ---- kernel B: sparse scores + ProbMask + softmax + context update ---------
    out2d = pl.pallas_call(
        partial(_sparse_update_kernel, H=H, D=D, u=u, scale=scale_val, BB=BB,
                approx_recip=approx_reciprocal),
        out_shape=jax.ShapeDtypeStruct((B, L_Q, HD), dtype),
        grid=grid,
        in_specs=[
            pl.BlockSpec((BB, L_Q, HD), lambda b: (b, 0, 0)),    # Q reused in-kernel
            pl.BlockSpec((BB, L_K, HD), lambda b: (b, 0, 0)),
            pl.BlockSpec((BB, L_K, HD), lambda b: (b, 0, 0)),
            pl.BlockSpec((BB, 1, HU), lambda b: (b, 0, 0)),
            pl.BlockSpec((BB, HU, 1), lambda b: (b, 0, 0)),
        ],
        out_specs=pl.BlockSpec((BB, L_Q, HD), lambda b: (b, 0, 0)),
        compiler_params=cparams,
    )(q2d, k2d, v2d, idx_row, idx_col)

    context = out2d.reshape(B, L_Q, H, D)                        # free reshape
    # output_attention=False -> attn is None
    return context, None


if __name__ == "__main__":
    # H*D = 128 -> lane-dense blocks; L_Q = L_K = 64 -> non-trivial top-k (u = 25).
    B, L, H, D = 2, 64, 4, 32
    key = jax.random.PRNGKey(0)
    kq, kk, kv = jax.random.split(key, 3)
    queries = jax.random.normal(kq, (B, L, H, D), dtype=jnp.bfloat16)
    keys_ = jax.random.normal(kk, (B, L, H, D), dtype=jnp.bfloat16)
    values = jax.random.normal(kv, (B, L, H, D), dtype=jnp.bfloat16)

    context, attn = prob_attention(queries, keys_, values, factor=5)
    context = jax.block_until_ready(context)
    assert context.shape == (B, L, H, D)
    assert context.dtype == queries.dtype
    assert bool(jnp.all(jnp.isfinite(context.astype(jnp.float32))))
    assert attn is None
    print("KERNEL_OK")
</pallas_src>

<mosaic_0001>
module attributes {stable_mosaic.version = 11 : i64} {
  func.func @_prob_qk_sample_kernel(%arg0: i32, %arg1: memref<1x64x128xbf16, #tpu.memory_space<vmem>>, %arg2: memref<1x64x128xbf16, #tpu.memory_space<vmem>>, %arg3: memref<64x256xf32, #tpu.memory_space<vmem>>, %arg4: memref<1x1x256xf32, #tpu.memory_space<vmem>>) attributes {dimension_semantics = [#tpu.dimension_semantics<parallel>], iteration_bounds = array<i64: 2>, scalar_prefetch = 0 : i64, scratch_operands = 0 : i64, tpu.core_type = #tpu.core_type<tc>, window_params = [{transform_indices = @transform_0, window_bounds = array<i64: 1, 64, 128>}, {transform_indices = @transform_1, window_bounds = array<i64: 1, 64, 128>}, {pipeline_mode = #tpu.pipeline_mode<synchronous>, transform_indices = @transform_2, window_bounds = array<i64: 64, 256>}, {transform_indices = @transform_3, window_bounds = array<i64: 1, 1, 256>}]} {
    %c0 = arith.constant 0 : index
    %c0_0 = arith.constant 0 : index
    %0 = vector.load %arg3[%c0, %c0_0] : memref<64x256xf32, #tpu.memory_space<vmem>>, vector<64x256xf32>
    %cst = arith.constant 0.000000e+00 : f32
    %1 = vector.broadcast %cst : f32 to vector<64x256xf32>
    %2 = arith.cmpf ogt, %0, %1 : vector<64x256xf32>
    %3 = tpu.iota {dimensions = array<i32: 1>} : vector<64x128xi32>
    %c0_i32 = arith.constant 0 : i32
    %4 = vector.broadcast %c0_i32 : i32 to vector<64x128xi32>
    %5 = arith.cmpi sge, %3, %4 : vector<64x128xi32>
    %c32_i32 = arith.constant 32 : i32
    %6 = vector.broadcast %c32_i32 : i32 to vector<64x128xi32>
    %7 = arith.cmpi slt, %3, %6 : vector<64x128xi32>
    %8 = arith.andi %5, %7 : vector<64x128xi1>
    %9 = arith.extui %8 : vector<64x128xi1> to vector<64x128xi32>
    %10 = arith.sitofp %9 : vector<64x128xi32> to vector<64x128xf32>
    %11 = arith.truncf %10 : vector<64x128xf32> to vector<64x128xbf16>
    %c32_i32_1 = arith.constant 32 : i32
    %12 = vector.broadcast %c32_i32_1 : i32 to vector<64x128xi32>
    %13 = arith.cmpi sge, %3, %12 : vector<64x128xi32>
    %c64_i32 = arith.constant 64 : i32
    %14 = vector.broadcast %c64_i32 : i32 to vector<64x128xi32>
    %15 = arith.cmpi slt, %3, %14 : vector<64x128xi32>
    %16 = arith.andi %13, %15 : vector<64x128xi1>
    %17 = arith.extui %16 : vector<64x128xi1> to vector<64x128xi32>
    %18 = arith.sitofp %17 : vector<64x128xi32> to vector<64x128xf32>
    %19 = arith.truncf %18 : vector<64x128xf32> to vector<64x128xbf16>
    %c64_i32_2 = arith.constant 64 : i32
    %20 = vector.broadcast %c64_i32_2 : i32 to vector<64x128xi32>
    %21 = arith.cmpi sge, %3, %20 : vector<64x128xi32>
    %c96_i32 = arith.constant 96 : i32
    %22 = vector.broadcast %c96_i32 : i32 to vector<64x128xi32>
    %23 = arith.cmpi slt, %3, %22 : vector<64x128xi32>
    %24 = arith.andi %21, %23 : vector<64x128xi1>
    %25 = arith.extui %24 : vector<64x128xi1> to vector<64x128xi32>
    %26 = arith.sitofp %25 : vector<64x128xi32> to vector<64x128xf32>
    %27 = arith.truncf %26 : vector<64x128xf32> to vector<64x128xbf16>
    %c96_i32_3 = arith.constant 96 : i32
    %28 = vector.broadcast %c96_i32_3 : i32 to vector<64x128xi32>
    %29 = arith.cmpi sge, %3, %28 : vector<64x128xi32>
    %c128_i32 = arith.constant 128 : i32
    %30 = vector.broadcast %c128_i32 : i32 to vector<64x128xi32>
    %31 = arith.cmpi slt, %3, %30 : vector<64x128xi32>
    %32 = arith.andi %29, %31 : vector<64x128xi1>
    %33 = arith.extui %32 : vector<64x128xi1> to vector<64x128xi32>
    %34 = arith.sitofp %33 : vector<64x128xi32> to vector<64x128xf32>
    %35 = arith.truncf %34 : vector<64x128xf32> to vector<64x128xbf16>
    %c0_4 = arith.constant 0 : index
    %c0_5 = arith.constant 0 : index
    %c0_6 = arith.constant 0 : index
    %36 = vector.load %arg1[%c0_4, %c0_5, %c0_6] : memref<1x64x128xbf16, #tpu.memory_space<vmem>>, vector<1x64x128xbf16>
    %37 = vector.shape_cast %36 : vector<1x64x128xbf16> to vector<64x128xbf16>
    %c0_7 = arith.constant 0 : index
    %c0_8 = arith.constant 0 : index
    %c0_9 = arith.constant 0 : index
    %38 = vector.load %arg2[%c0_7, %c0_8, %c0_9] : memref<1x64x128xbf16, #tpu.memory_space<vmem>>, vector<1x64x128xbf16>
    %39 = vector.shape_cast %38 : vector<1x64x128xbf16> to vector<64x128xbf16>
    %40 = arith.mulf %37, %11 : vector<64x128xbf16>
    %41 = arith.mulf %37, %19 : vector<64x128xbf16>
    %42 = arith.mulf %37, %27 : vector<64x128xbf16>
    %43 = arith.mulf %37, %35 : vector<64x128xbf16>
    %44 = tpu.concatenate %40, %41, %42, %43 in 0 : vector<64x128xbf16>, vector<64x128xbf16>, vector<64x128xbf16>, vector<64x128xbf16> -> vector<256x128xbf16>
    %cst_10 = arith.constant dense<0.000000e+00> : vector<64x256xf32>
    %45 = tpu.matmul %39, %44, %cst_10 {dimension_numbers = #tpu.dot_dimension_numbers<[1], [1], [0], [0], [0, 0, 1, 0], [], []>} : vector<64x128xbf16>, vector<256x128xbf16>, vector<64x256xf32> -> vector<64x256xf32>
    %cst_11 = arith.constant 0xFF800000 : f32
    %46 = vector.broadcast %cst_11 : f32 to vector<64x256xf32>
    %47 = arith.select %2, %45, %46 : vector<64x256xi1>, vector<64x256xf32>
    %cst_12 = arith.constant dense<0xFF800000> : vector<256xf32>
    %48 = vector.multi_reduction <maximumf>, %47, %cst_12 [0] : vector<64x256xf32> to vector<256xf32>
    %49 = vector.shape_cast %48 : vector<256xf32> to vector<1x256xf32>
    %50 = arith.mulf %45, %0 : vector<64x256xf32>
    %cst_13 = arith.constant dense<0.000000e+00> : vector<256xf32>
    %51 = vector.multi_reduction <add>, %50, %cst_13 [0] : vector<64x256xf32> to vector<256xf32>
    %52 = vector.shape_cast %51 : vector<256xf32> to vector<1x256xf32>
    %cst_14 = arith.constant 1.562500e-02 : f32
    %53 = vector.broadcast %cst_14 : f32 to vector<1x256xf32>
    %54 = arith.mulf %52, %53 : vector<1x256xf32>
    %55 = arith.subf %49, %54 : vector<1x256xf32>
    %c0_15 = arith.constant 0 : index
    %c0_16 = arith.constant 0 : index
    %c0_17 = arith.constant 0 : index
    %56 = vector.load %arg4[%c0_15, %c0_16, %c0_17] : memref<1x1x256xf32, #tpu.memory_space<vmem>>, vector<1x1x256xf32>
    %57 = vector.shape_cast %56 : vector<1x1x256xf32> to vector<1x256xf32>
    %58 = vector.shape_cast %55 : vector<1x256xf32> to vector<1x1x256xf32>
    tpu.vector_store %arg4[%c0_15, %c0_16, %c0_17], %58 {strides = array<i32>} : memref<1x1x256xf32, #tpu.memory_space<vmem>>, vector<1x1x256xf32>,
    return
  }
  func.func @transform_0(%arg0: i32) -> (i32, i32, i32) {
    %c0_i32 = arith.constant 0 : i32
    %c0_i32_0 = arith.constant 0 : i32
    %c0_i32_1 = arith.constant 0 : i32
    return %arg0, %c0_i32, %c0_i32_0 : i32, i32, i32
  }
  func.func @transform_1(%arg0: i32) -> (i32, i32, i32) {
    %c0_i32 = arith.constant 0 : i32
    %c0_i32_0 = arith.constant 0 : i32
    %c0_i32_1 = arith.constant 0 : i32
    return %arg0, %c0_i32, %c0_i32_0 : i32, i32, i32
  }
  func.func @transform_2(%arg0: i32) -> (i32, i32) {
    %c0_i32 = arith.constant 0 : i32
    %c0_i32_0 = arith.constant 0 : i32
    %c0_i32_1 = arith.constant 0 : i32
    return %c0_i32, %c0_i32_0 : i32, i32
  }
  func.func @transform_3(%arg0: i32) -> (i32, i32, i32) {
    %c0_i32 = arith.constant 0 : i32
    %c0_i32_0 = arith.constant 0 : i32
    %c0_i32_1 = arith.constant 0 : i32
    return %arg0, %c0_i32, %c0_i32_0 : i32, i32, i32
  }
}

</mosaic_0001>

<bundles_post_ra>
// kernel: tpu_custom_call.1
= control target key start
LH: loop header
LB: loop body
LE: loop exit
PB: predicated region body
PF: predicated region fallthrough
CT: control target
= control target key end

     0   :  { %8 = vsyncpa [#allocation3], 0  ;;  %s1507_s0 = inlined_call_operand.hbm [shape: bf16[2,64,128], index: 0, kind: input, shape index: {}]   ;;  %s1508_s1 = inlined_call_operand.hbm [shape: bf16[2,64,128], index: 1, kind: input, shape index: {}]   ;;  %s1509_s2 = inlined_call_operand.hbm [shape: f32[64,256], index: 2, kind: input, shape index: {}]   ;;  %s1510_s3 = inlined_call_operand.hbm [shape: f32[2,1,256], index: 3, kind: output, shape index: {}]  }
   0x1   :  { %10 = vsyncpa [#allocation3 + $0x1], 0 }
   0x2   :  { %11 = vsyncpa [#allocation6], 0 }
   0x3   :  { %13 = vsyncpa [#allocation6 + $0x1], 0 }
   0x4   :  { %14 = vsyncpa [#allocation4], 0 }
   0x5   :  { %16 = vsyncpa [#allocation4 + $0x1], 0  ;;  %s1148_s12 = smov 0   ;;  %s1150_s13 = smov 0  }
   0x6   :  { %s1152_s14 = smov 0   ;;  %s1154_s15 = smov 0  }
   0x7 LB: > { %s1169_s16 = sadd.s32 4294967295, %s1116_s15   ;;  %s787_s17 = sadd.s32 4294967294, %s1116_s15   ;;  %s1116_s15 = sphi %s1154_s15, %s1530_s15   ;;  %s1112_s14 = sphi %s1152_s14, %s1529_s14   ;;  %s1108_s13 = sphi %s1150_s13, %s1528_s13   ;;  %s1104_s12 = sphi %s1148_s12, %s1527_s12  }
   0x8   : > { %p42_p0 = scmp.ne.s32.totalorder %s1108_s13, %s1104_s12  ;;  %p1511_p1 = scmp.eq.s32.totalorder %s1169_s16, 0 }
   0x9   : > { %p119_p3 = scmp.eq.s32.totalorder %s787_s17, 1  ;;  %p788_p5 = scmp.ge.s32.totalorder %s1116_s15, 1 }
   0xa   : > { %p1178_p4 = por %p1511_p1, %p42_p0  ;;  %p126_p7 = scmp.lt.s32.totalorder %s1116_s15, 3 }
   0xb   : > { %p1183_p6 = por %p119_p3, %p42_p0  ;;  %s1118_s21 = smov [#allocation7]  }
   0xc   : > { %s1514_s18 = scalar_select %p1178_p4, 1, 0 }
   0xd   : > { %s1515_s19 = scalar_select %p1183_p6, 1, 0 }
   0xe   : > { %p1188_p8 = pnand %p788_p5, %p126_p7  ;;  %s138_s22 = sshll.u32 %s1118_s21, 4  ;;  %s1192_s22 = int_to_ptr.vmem [resolvable:$true] %s138_s22 }
   0xf   : > { %s1204_s24 = sadd.s32 1, %s1116_s15   ;;  %s29_s25 = sadd.s32 1, %s1112_s14 }
  0x10   : > { %s1516_s20 = scalar_select %p1188_p8, 1, 0 }
  0x11   : > { %p892_p9 = pneg %p1188_p8  ;;  %s26_s26 = ssub.s32 %s1116_s15, %s1204_s24 }
  0x12   : > { %s954_s29 = scalar_lea.hbm %s1509_s2, 2048 }
  0x13   : > { %p1199_p11 = pnand %p892_p9, %p1511_p1  ;;  %p955_p12 = scmp.ne.s32.totalorder %s1509_s2, %s954_s29 }
  0x14   : > { %p961_p5 = scmp.lt.u32.totalorder %s954_s29, %s1509_s2 }
  0x15   : > { %p956_p13 = pneg %p1199_p11 }
  0x17   : > { %p957_p0 = pnand %p956_p13, %p955_p12 }
  0x19   : > { %p958_p3 = pneg %p957_p0 }
  0x1b   : > { %p963_p7 = pnand %p961_p5, %p958_p3 }
  0x1d   : > { %966 = shalt.err (!%p963_p7)
}
  0x1e   : > { %s967_s7 = scalar_lea.vmem %s1192_s22, 2048  ;;  %p975_p2 = scmp.lt.s32.totalorder %s1192_s22, %s1192_s22 }
  0x1f   : > { %p968_p9 = scmp.ne.s32.totalorder %s1192_s22, %s967_s7  ;;  %p976_p6 = scmp.lt.s32.totalorder %s967_s7, %s967_s7 }
  0x21   : > { %p970_p10 = pnand %p968_p9, %p956_p13  ;;  %p977_p4 = por %p976_p6, %p975_p2 }
  0x23   : > { %p971_p1 = pneg %p970_p10 }
  0x25   : > { %p978_p8 = pnand %p977_p4, %p971_p1 }
  0x27   : > { %981 = shalt.err (!%p978_p8)
}
  0x28   : > { %s1119_s8 = smov 256   ;;  %s1120_s9 = smov 16  }
  0x29   : > { %895 = dma.hbm_to_vmem [thread:$0]  (!%p1199_p11), %s1509_s2, 2048, %s1192_s22, [#allocation6], %s1119_s8, %s1119_s8, %s1120_s9  }
  0x2a   : > { %p27_p1 = scmp.eq.s32.totalorder %s26_s26, 0  ;;  %p36_p2 = scmp.ne.s32.totalorder %s1112_s14, %s1108_s13 }
  0x2b   : > { %p37_p4 = scmp.eq.s32.totalorder %s1116_s15, 0  ;;  %p908_p6 = scmp.lt.s32.totalorder %s1116_s15, 2 }
  0x2c   : > { %s1235_s17 = scalar_select %p27_p1, %s1112_s14, %s29_s25  }
  0x2d   : > { %p38_p8 = por %p37_p4, %p36_p2  ;;  %p1518_p10 = scmp.eq.s32.totalorder %s1169_s16, 1 }
  0x2e   : > { %s152_s27 = sand.u32 1, %s1112_s14   ;;  %s835_s28 = sshll.u32 %s1116_s15, 9 }
  0x2f   : > { %p1239_p12 = por %p1518_p10, %p36_p2  ;;  %s1245_s29 = sshll.u32 %s152_s27, 5 }
  0x30   : > { %s1252_s22 = scalar_lea.hbm %s1507_s0, %s835_s28  ;;  %s156_s25 = scalar_lea.vmem [#allocation2], %s1245_s29 }
  0x31   : > { %s163_s26 = sshll.u32 %s156_s25, 4  ;;  %p1255_p11 = pnand %p908_p6, %p38_p8  ;;  %s1259_s26 = int_to_ptr.vmem [resolvable:$true] %s163_s26 }
  0x32   : > { %s1261_s5 = scalar_lea.sflag [#allocation3], %s152_s27  ;;  %s982_s6 = scalar_lea.hbm %s1252_s22, 512 }
  0x33   : > { %p983_p13 = scmp.ne.s32.totalorder %s1252_s22, %s982_s6  ;;  %p984_p0 = pneg %p1255_p11 }
  0x34   : > { %s987_s9 = scalar_lea.hbm %s1507_s0, 1024  ;;  %p988_p7 = scmp.lt.u32.totalorder %s1252_s22, %s1507_s0 }
  0x35   : > { %p985_p3 = pnand %p984_p0, %p983_p13  ;;  %p989_p9 = scmp.lt.u32.totalorder %s987_s9, %s982_s6 }
  0x36   : > { %p991_p2 = scmp.lt.u32.totalorder %s982_s6, %s1252_s22 }
  0x37   : > { %p986_p5 = pneg %p985_p3  ;;  %p990_p1 = por %p989_p9, %p988_p7 }
  0x39   : > { %p992_p4 = por %p991_p2, %p990_p1 }
  0x3b   : > { %p993_p6 = pnand %p992_p4, %p986_p5 }
  0x3d   : > { %996 = shalt.err (!%p993_p6)
}
  0x3e   : > { %s997_s27 = scalar_lea.vmem %s1259_s26, 512  ;;  %s1121_s23 = smov [#allocation2]  }
  0x3f   : > { %p998_p8 = scmp.ne.s32.totalorder %s1259_s26, %s997_s27  ;;  %s1002_s30 = sshll.u32 %s1121_s23, 4  ;;  %s1003_s30 = int_to_ptr.vmem [resolvable:$false] %s1002_s30 }
  0x40   : > { %s1004_s25 = scalar_lea.vmem %s1003_s30, 1024  ;;  %p1005_p3 = scmp.lt.s32.totalorder %s1259_s26, %s1003_s30 }
  0x41   : > { %p1000_p10 = pnand %p998_p8, %p984_p0  ;;  %p1006_p7 = scmp.lt.s32.totalorder %s1004_s25, %s997_s27 }
  0x43   : > { %p1001_p13 = pneg %p1000_p10  ;;  %p1007_p9 = por %p1006_p7, %p1005_p3 }
  0x45   : > { %p1008_p1 = pnand %p1007_p9, %p1001_p13 }
  0x47   : > { %1011 = shalt.err (!%p1008_p1)
}
  0x48   : > { %s1122_s6 = smov 64   ;;  %s1123_s7 = smov 4  }
  0x49   : > { %899 = dma.hbm_to_vmem [thread:$0]  (!%p1255_p11), %s1252_s22, 512, %s1259_s26, %s1261_s5, %s1122_s6, %s1122_s6, %s1123_s7  }
  0x4a   : > { %s1297_s10 = scalar_lea.hbm %s1508_s1, %s835_s28  ;;  %s177_s11 = scalar_lea.vmem [#allocation5], %s1245_s29 }
  0x4b   : > { %s184_s27 = sshll.u32 %s177_s11, 4  ;;  %s173_s23 = sand.u32 1, %s1116_s15   ;;  %s1301_s27 = int_to_ptr.vmem [resolvable:$true] %s184_s27 }
  0x4c   : > { %s1303_s30 = scalar_lea.sflag [#allocation6], %s173_s23  ;;  %s1012_s25 = scalar_lea.hbm %s1297_s10, 512 }
  0x4d   : > { %p1013_p5 = scmp.ne.s32.totalorder %s1297_s10, %s1012_s25  ;;  %s1017_s26 = scalar_lea.hbm %s1508_s1, 1024 }
  0x4e   : > { %p1018_p6 = scmp.lt.u32.totalorder %s1297_s10, %s1508_s1  ;;  %p1019_p8 = scmp.lt.u32.totalorder %s1017_s26, %s1012_s25 }
  0x4f   : > { %p1015_p2 = pnand %p1013_p5, %p984_p0  ;;  %p1021_p13 = scmp.lt.u32.totalorder %s1012_s25, %s1297_s10 }
  0x50   : > { %p1020_p10 = por %p1019_p8, %p1018_p6 }
  0x51   : > { %p1016_p4 = pneg %p1015_p2 }
  0x52   : > { %p1022_p3 = por %p1021_p13, %p1020_p10 }
  0x54   : > { %p1023_p7 = pnand %p1022_p3, %p1016_p4 }
  0x56   : > { %1026 = shalt.err (!%p1023_p7)
}
  0x57   : > { %s1027_s29 = scalar_lea.vmem %s1301_s27, 512  ;;  %s1124_s9 = smov [#allocation5]  }
  0x58   : > { %p1028_p9 = scmp.ne.s32.totalorder %s1301_s27, %s1027_s29  ;;  %s1032_s11 = sshll.u32 %s1124_s9, 4  ;;  %s1033_s11 = int_to_ptr.vmem [resolvable:$false] %s1032_s11 }
  0x59   : > { %s1034_s23 = scalar_lea.vmem %s1033_s11, 1024  ;;  %p1035_p2 = scmp.lt.s32.totalorder %s1301_s27, %s1033_s11 }
  0x5a   : > { %p1030_p1 = pnand %p1028_p9, %p984_p0  ;;  %p1036_p6 = scmp.lt.s32.totalorder %s1034_s23, %s1027_s29 }
  0x5c   : > { %p1031_p5 = pneg %p1030_p1  ;;  %p1037_p8 = por %p1036_p6, %p1035_p2 }
  0x5e   : > { %p1038_p10 = pnand %p1037_p8, %p1031_p5 }
  0x60   : > { %1041 = shalt.err (!%p1038_p10)
}
  0x61   : > { %902 = dma.hbm_to_vmem [thread:$0]  (!%p1255_p11), %s1297_s10, 512, %s1301_s27, %s1303_s30, %s1122_s6, %s1122_s6, %s1123_s7  }
  0x62   : > { %p1521_p0 = scmp.ne.s32.totalorder %s1516_s20, 0 }
  0x63   : > { %s1335_s25 = sand.u32 (!%p1521_p0), 1, %s1108_s13   ;;  %p1522_p4 = scmp.ne.s32.totalorder (!%p1521_p0), %s1514_s18, 0 }
  0x64   : > { %196 = sbr.rel (%p1521_p0) target bundleno = 462 (0x1ce), region = 32  ;;  %s798_s22 = sshll.u32 (!%p1521_p0), %s1335_s25, 5 }
  0x65   : > { %s199_s28 = scalar_lea.sflag (!%p1521_p0), [#allocation3], %s1335_s25  ;;  %s1339_s26 = scalar_lea.vmem (!%p1521_p0), [#allocation2], %s798_s22 }
  0x6b   : > { %1087 = dma.done.wait (%p1522_p4), %s199_s28, 512  }
  0x6c   : > { %1089 = vsyncadd (%p1522_p4), %s199_s28, 4294966784  ;;  %s207_s4 = sand.u32 1, %s1169_s16   ;;  %s1346_s6 = scalar_lea.vmem [#allocation5], %s798_s22 }
  0x6d   : > { %s208_s20 = scalar_lea.sflag [#allocation6], %s207_s4 }
  0x6e   : > { %1091 = dma.done.wait (%p1522_p4), %s208_s20, 512  }
  0x6f   : > { %1093 = vsyncadd (%p1522_p4), %s208_s20, 4294966784  ;;  %p1523_p11 = scmp.eq.s32.totalorder %s1169_s16, 0 }
  0x71   : > { %1095 = dma.done.wait (%p1523_p11), [#allocation6], 2048   ;;  %p1524_p13 = pmov %p1523_p11 }
  0x72   : > { %v276_v0 = vlaneseq  ;;  %v1125_v2 = vmov 0.0   ;;  %v1358_v6 = vld [vmem:[%s1339_s26] sm:$0xf]  ;;  %v1361_v7 = vld [vmem:[%s1339_s26 + $0x4] sm:$0xf]  ;;  %v1386_v23 = vld [vmem:[%s1346_s6 + $0x10] sm:$0xff]  }
  0x73   : > { %1097 = vsyncadd (%p1524_p13), [#allocation6], 4294965248  ;;  %v1364_v9 = vld [vmem:[%s1339_s26 + $0x8] sm:$0xf]  ;;  %v1369_v12 = vld [vmem:[%s1339_s26 + $0xc] sm:$0xf]  ;;  %862 = vmatprep.mubr.bf16.mxu1 %v1386_v23 }
  0x74   : > { %v277_v1 = vand.u32 127, %v276_v0  ;;  %v1376_v18 = vld [vmem:[%s1339_s26 + $0x10] sm:$0xf]  ;;  %v1379_v19 = vld [vmem:[%s1346_s6] sm:$0xff]   ;;  %v1382_v22 = vld [vmem:[%s1339_s26 + $0x14] sm:$0xf] }
  0x75   : > { %858 = vmatprep.mubr.bf16.mxu0 %v1379_v19  ;;  %v1394_v30 = vld [vmem:[%s1339_s26 + $0x18] sm:$0xf]  ;;  %v1397_v31 = vld [vmem:[%s1339_s26 + $0x1c] sm:$0xf]  ;;  %s801_s18 = sshll.u32 %s1335_s25, 1  ;;  %s841_s7 = sshll.u32 %s1169_s16, 5 }
  0x76   : > { %vm290_vm0 = vcmp.ge.s32.totalorder %v277_v1, 64  ;;  %vm291_vm1 = vcmp.lt.s32.totalorder %v277_v1, 96  ;;  %vm279_vm2 = vcmp.lt.s32.totalorder %v277_v1, 32  ;;  %vm296_vm4 = vcmp.ge.s32.totalorder %v277_v1, 96  ;;  %s242_s10 = scalar_lea.vmem [#allocation8], %s801_s18  ;;  %s1463_s8 = scalar_lea.hbm %s1510_s3, %s841_s7 }
  0x77   : > { %vm292_vm3 = vmand %vm290_vm0, %vm291_vm1  ;;  %v802_v3 = vsel %vm279_vm2, 1.0, %v1125_v2  ;;  %v805_v36 = vsel %vm296_vm4, 1.0, %v1125_v2  ;;  %vm284_vm5 = vcmp.ge.s32.totalorder %v277_v1, 32  ;;  %vm285_vm6 = vcmp.lt.s32.totalorder %v277_v1, 64  ;;  %s685_s27 = sshll.u32 %s242_s10, 4  ;;  %s671_s29 = scalar_lea.sflag [#allocation4], %s1335_s25  ;;  %s1465_s27 = int_to_ptr.vmem [resolvable:$true] %s685_s27 }
  0x78   : > { %v804_v4 = vsel %vm292_vm3, 1.0, %v1125_v2  ;;  %v837_v5 = vpack.c.bf16 %v802_v3, %v802_v3  ;;  %v840_v39 = vpack.c.bf16 %v805_v36, %v805_v36  ;;  %vm286_vm7 = vmand %vm284_vm5, %vm285_vm6  ;;  %s1042_s9 = scalar_lea.vmem %s1465_s27, 32  ;;  %s1127_s16 = smov [#allocation8]  }
  0x79   : > { %v839_v8 = vpack.c.bf16 %v804_v4, %v804_v4  ;;  %v803_v44 = vsel %vm286_vm7, 1.0, %v1125_v2  ;;  %p1043_p3 = scmp.ne.s32.totalorder %s1465_s27, %s1042_s9  ;;  %s1046_s11 = sshll.u32 %s1127_s16, 4  ;;  %s1047_s11 = int_to_ptr.vmem [resolvable:$false] %s1046_s11 }
  0x7a   : > { %v322_v10 = vmul.bf16 %v837_v5, %v1358_v6  ;;  %v323_v11 = vmul.bf16 %v837_v5, %v1361_v7  ;;  %v324_v24 = vmul.bf16 %v837_v5, %v1364_v9  ;;  %v325_v25 = vmul.bf16 %v837_v5, %v1369_v12  ;;  %s1048_s23 = scalar_lea.vmem %s1047_s11, 64  ;;  %p1049_p1 = scmp.lt.s32.totalorder %s1465_s27, %s1047_s11 }
  0x7b   : > { %v346_v13 = vmul.bf16 %v839_v8, %v1358_v6  ;;  %v347_v14 = vmul.bf16 %v839_v8, %v1361_v7  ;;  %v348_v15 = vmul.bf16 %v839_v8, %v1364_v9  ;;  %v349_v16 = vmul.bf16 %v839_v8, %v1369_v12  ;;  %p1044_p7 = pnand %p1043_p3, %p1239_p12  ;;  %p1050_p5 = scmp.lt.s32.totalorder %s1048_s23, %s1042_s9 }
  0x7c   : > { %v810_v17 = vcombine.low %v322_v10, %v323_v11  ;;  %v350_v26 = vmul.bf16 %v839_v8, %v1376_v18  ;;  %v351_v27 = vmul.bf16 %v839_v8, %v1382_v22  ;;  %v811_v28 = vcombine.low %v324_v24, %v325_v25  ;;  %v246_v10 = vld [vmem:[#allocation7 + $0x10] sm:$0xff]  ;;  %v247_v11 = vld [vmem:[#allocation7 + $0x18] sm:$0xff]  ;;  %v256_v24 = vld [vmem:[#allocation7 + $0x60] sm:$0xff] }
  0x7d   : > { %v818_v20 = vcombine.low %v346_v13, %v347_v14  ;;  %v819_v21 = vcombine.low %v348_v15, %v349_v16  ;;  %v326_v32 = vmul.bf16 %v837_v5, %v1376_v18  ;;  %v327_v33 = vmul.bf16 %v837_v5, %v1382_v22  ;;  %v253_v13 = vld [vmem:[#allocation7 + $0x48] sm:$0xff]  ;;  %v254_v14 = vld [vmem:[#allocation7 + $0x50] sm:$0xff]  ;;  %v248_v15 = vld [vmem:[#allocation7 + $0x20] sm:$0xff]  ;;  %p1045_p9 = pneg %p1044_p7  ;;  %p1051_p2 = por %p1050_p5, %p1049_p1 }
  0x7e   : > { %v820_v29 = vcombine.low %v350_v26, %v351_v27  ;;  %v352_v34 = vmul.bf16 %v839_v8, %v1394_v30  ;;  %v353_v35 = vmul.bf16 %v839_v8, %v1397_v31  ;;  %v328_v40 = vmul.bf16 %v837_v5, %v1394_v30  ;;  %v244_v8 = vld [vmem:[#allocation7] sm:$0xff]  ;;  %v255_v16 = vld [vmem:[#allocation7 + $0x58] sm:$0xff]  ;;  %v1425_v27 = vld [vmem:[#allocation7 + $0x68] sm:$0xff] }
  0x7f   : > { %842 = vmatprep.subr.bf16.mxu0 %v818_v20  ;;  %866 = vmatprep.subr.bf16.mxu1 %v818_v20  ;;  %v812_v37 = vcombine.low %v326_v32, %v327_v33  ;;  %v329_v41 = vmul.bf16 %v837_v5, %v1397_v31  ;;  %v358_v42 = vmul.bf16 %v840_v39, %v1358_v6  ;;  %vm260_vm8 = vcmp.gt.f32.partialorder %v244_v8, 0.0  ;;  %v250_v20 = vld [vmem:[#allocation7 + $0x30] sm:$0xff]  ;;  %p1052_p6 = pnand %p1051_p2, %p1045_p9 }
  0x80   : > { %843 = vmatpush3.bf16.xpose.msra.mxu0 %v810_v17  ;;  %874 = vmatpush3.bf16.xpose.msra.mxu1 %v810_v17  ;;  %v821_v38 = vcombine.low %v352_v34, %v353_v35  ;;  %v359_v43 = vmul.bf16 %v840_v39, %v1361_v7  ;;  %v838_v46 = vpack.c.bf16 %v803_v44, %v803_v44  ;;  %vm262_vm10 = vcmp.gt.f32.partialorder %v246_v10, 0.0 }
  0x81   : > { %844 = vmatprep.subr.bf16.mxu0 %v819_v21  ;;  %867 = vmatprep.subr.bf16.mxu1 %v819_v21  ;;  %v813_v45 = vcombine.low %v328_v40, %v329_v41  ;;  %v360_v50 = vmul.bf16 %v840_v39, %v1364_v9  ;;  %v361_v51 = vmul.bf16 %v840_v39, %v1369_v12  ;;  %vm263_vm11 = vcmp.gt.f32.partialorder %v247_v11, 0.0 }
  0x82   : > { %v822_v47 = vcombine.low %v358_v42, %v359_v43  ;;  %v334_v48 = vmul.bf16 %v838_v46, %v1358_v6  ;;  %v335_v49 = vmul.bf16 %v838_v46, %v1361_v7  ;;  %v336_v54 = vmul.bf16 %v838_v46, %v1364_v9  ;;  %v952_v6 = vld [vmem:[%s1346_s6 + $0x8] sm:$0xff]   ;;  %v953_v7 = vld [vmem:[%s1346_s6 + $0x18] sm:$0xff]  }
  0x83   : > { %v823_v53 = vcombine.low %v360_v50, %v361_v51  ;;  %v337_v55 = vmul.bf16 %v838_v46, %v1369_v12  ;;  %v362_v56 = vmul.bf16 %v840_v39, %v1376_v18  ;;  %v363_v57 = vmul.bf16 %v840_v39, %v1382_v22  ;;  %v245_v9 = vld [vmem:[#allocation7 + $0x8] sm:$0xff]  ;;  %v252_v12 = vld [vmem:[#allocation7 + $0x40] sm:$0xff] }
  0x84   : > { %v814_v52 = vcombine.low %v334_v48, %v335_v49  ;;  %v338_v60 = vmul.bf16 %v838_v46, %v1376_v18  ;;  %v339_v61 = vmul.bf16 %v838_v46, %v1382_v22  ;;  %v364_v62 = vmul.bf16 %v840_v39, %v1394_v30 }
  0x85   : > { %v815_v58 = vcombine.low %v336_v54, %v337_v55  ;;  %v824_v59 = vcombine.low %v362_v56, %v363_v57  ;;  %v365_v63 = vmul.bf16 %v840_v39, %v1397_v31  ;;  %v340_v3 = vmul.bf16 %v838_v46, %v1394_v30 }
  0x86   : > { %v816_v1 = vcombine.low %v338_v60, %v339_v61  ;;  %v341_v4 = vmul.bf16 %v838_v46, %v1397_v31  ;;  %vm261_vm9 = vcmp.gt.f32.partialorder %v245_v9, 0.0  ;;  %vm268_vm12 = vcmp.gt.f32.partialorder %v252_v12, 0.0 }
  0x87   : > { %v825_v2 = vcombine.low %v364_v62, %v365_v63  ;;  %vm269_vm13 = vcmp.gt.f32.partialorder %v253_v13, 0.0  ;;  %vm270_vm14 = vcmp.gt.f32.partialorder %v254_v14, 0.0  ;;  %vm264_vm15 = vcmp.gt.f32.partialorder %v248_v15, 0.0 }
  0x88   : > { %845 = vmatpush3.bf16.xpose.msra.mxu0 %v811_v28  ;;  %875 = vmatpush3.bf16.xpose.msra.mxu1 %v811_v28  ;;  %v817_v5 = vcombine.low %v340_v3, %v341_v4  ;;  %vm271_vm0 = vcmp.gt.f32.partialorder %v255_v16, 0.0  ;;  %v1427_v28 = vld [vmem:[#allocation7 + $0x70] sm:$0xff]  ;;  %vm266_vm2 = vcmp.gt.f32.partialorder %v250_v20, 0.0  ;;  %vm272_vm4 = vcmp.gt.f32.partialorder %v256_v24, 0.0 }
  0x89   : > { %846 = vmatprep.subr.bf16.mxu0 %v820_v29  ;;  %868 = vmatprep.subr.bf16.mxu1 %v820_v29  ;;  %v1429_v29 = vld [vmem:[#allocation7 + $0x78] sm:$0xff]  ;;  %vm273_vm5 = vcmp.gt.f32.partialorder %v1425_v27, 0.0  ;;  %vm274_vm6 = vcmp.gt.f32.partialorder %v1427_v28, 0.0 }
  0x8a   : > { %vm275_vm7 = vcmp.gt.f32.partialorder %v1429_v29, 0.0 }
  0x90   : > { %847 = vmatpush3.bf16.xpose.msra.mxu0 %v812_v37  ;;  %876 = vmatpush3.bf16.xpose.msra.mxu1 %v812_v37 }
  0x91   : > { %848 = vmatprep.subr.bf16.mxu0 %v821_v38  ;;  %869 = vmatprep.subr.bf16.mxu1 %v821_v38 }
  0x98   : > { %849 = vmatpush3.bf16.xpose.msra.mxu0 %v813_v45  ;;  %877 = vmatpush3.bf16.xpose.msra.mxu1 %v813_v45 }
  0x99   : > { %850 = vmatprep.subr.bf16.mxu0 %v822_v47  ;;  %870 = vmatprep.subr.bf16.mxu1 %v822_v47 }
  0xa0   : > { %851 = vmatpush3.bf16.xpose.msra.mxu0 %v814_v52  ;;  %878 = vmatpush3.bf16.xpose.msra.mxu1 %v814_v52 }
  0xa1   : > { %852 = vmatprep.subr.bf16.mxu0 %v823_v53  ;;  %871 = vmatprep.subr.bf16.mxu1 %v823_v53 }
  0xa8   : > { %853 = vmatpush3.bf16.xpose.msra.mxu0 %v815_v58  ;;  %879 = vmatpush3.bf16.xpose.msra.mxu1 %v815_v58 }
  0xa9   : > { %854 = vmatprep.subr.bf16.mxu0 %v824_v59  ;;  %872 = vmatprep.subr.bf16.mxu1 %v824_v59 }
  0xb0   : > { %855 = vmatpush3.bf16.xpose.msra.mxu0 %v816_v1  ;;  %880 = vmatpush3.bf16.xpose.msra.mxu1 %v816_v1 }
  0xb1   : > { %856 = vmatprep.subr.bf16.mxu0 %v825_v2  ;;  %873 = vmatprep.subr.bf16.mxu1 %v825_v2 }
  0xb8   : > { %857 = vmatpush3.bf16.xpose.msra.mxu0 %v817_v5  ;;  %881 = vmatpush3.bf16.xpose.msra.mxu1 %v817_v5 }
  0xbf   : > { %859 = vmatmul.mubr.bf16.vlgmr.msra.gmra.mrb[0].mxu0 %v1379_v19  ;;  %863 = vmatmul.mubr.bf16.vlgmr.msra.gmra.mrb[0].mxu1 %v1386_v23  ;;  %v249_v19 = vld [vmem:[#allocation7 + $0x28] sm:$0xff]  ;;  %v251_v23 = vld [vmem:[#allocation7 + $0x38] sm:$0xff] }
  0xc0   : > { %860 = vmatprep.mubr.bf16.mxu0 %v952_v6  ;;  %864 = vmatprep.mubr.bf16.mxu1 %v953_v7  ;;  %vm265_vm1 = vcmp.gt.f32.partialorder %v249_v19, 0.0  ;;  %vm267_vm3 = vcmp.gt.f32.partialorder %v251_v23, 0.0 }
  0xc7   : > { %861 = vmatmul.mubr.bf16.gmra.mrb[4].mxu0 %v952_v6  ;;  %865 = vmatmul.mubr.bf16.gmra.mrb[4].mxu1 %v953_v7 }
 0x192   : > { %v520_v17 = vpop.f32.mrb[0].mxu0  ;;  %v540_v18 = vpop.f32.mrb[0].mxu1 }
 0x193   : > { %v522_v21 = vpop.f32.mrb[1].mxu0  ;;  %v542_v22 = vpop.f32.mrb[1].mxu1  ;;  %v601_v30 = vmul.f32 %v520_v17, %v244_v8  ;;  %v559_v37 = vsel %vm260_vm8, %v520_v17, -inf  ;;  %v567_v39 = vsel %vm268_vm12, %v540_v18, -inf  ;;  %v609_v40 = vmul.f32 %v540_v18, %v252_v12 }
 0x194   : > { %v524_v25 = vpop.f32.mrb[2].mxu0  ;;  %v544_v26 = vpop.f32.mrb[2].mxu1  ;;  %v602_v34 = vmul.f32 %v522_v21, %v245_v9  ;;  %v560_v41 = vsel %vm261_vm9, %v522_v21, -inf  ;;  %v568_v43 = vsel %vm269_vm13, %v542_v22, -inf  ;;  %v610_v44 = vmul.f32 %v542_v22, %v253_v13 }
 0x195   : > { %v603_v31 = vmul.f32 %v524_v25, %v246_v10  ;;  %v526_v32 = vpop.f32.mrb[3].mxu0  ;;  %v546_v33 = vpop.f32.mrb[3].mxu1  ;;  %v561_v42 = vsel %vm262_vm10, %v524_v25, -inf  ;;  %v569_v46 = vsel %vm270_vm14, %v544_v26, -inf  ;;  %v611_v47 = vmul.f32 %v544_v26, %v254_v14 }
 0x196   : > { %v604_v35 = vmul.f32 %v526_v32, %v247_v11  ;;  %v562_v45 = vsel %vm263_vm11, %v526_v32, -inf  ;;  %v570_v49 = vsel %vm271_vm0, %v546_v33, -inf  ;;  %v612_v53 = vmul.f32 %v546_v33, %v255_v16 }
 0x197   : > { %v617_v36 = vadd.f32 %v603_v31, %v601_v30  ;;  %vm667_vm8 = vcmp.lt.s32.totalorder %v276_v0, 256 }
 0x198   : > { %v630_v38 = vadd.f32 %v604_v35, %v602_v34 }
 0x19a   : > { %v530_v48 = vpop.f32.mrb[4].mxu0  ;;  %v550_v50 = vpop.f32.mrb[4].mxu1 }
 0x19b   : > { %v563_v51 = vsel %vm264_vm15, %v530_v48, -inf  ;;  %v605_v52 = vmul.f32 %v530_v48, %v248_v15  ;;  %v532_v54 = vpop.f32.mrb[5].mxu0  ;;  %v571_v55 = vsel %vm272_vm4, %v550_v50, -inf  ;;  %v552_v56 = vpop.f32.mrb[5].mxu1  ;;  %v613_v15 = vmul.f32 %v550_v50, %v256_v24 }
 0x19c   : > { %v575_v57 = vmax.f32 %v559_v37, %v563_v51  ;;  %v564_v58 = vsel %vm265_vm1, %v532_v54, -inf  ;;  %v606_v59 = vmul.f32 %v532_v54, %v249_v19  ;;  %v534_v60 = vpop.f32.mrb[6].mxu0  ;;  %v572_v61 = vsel %vm273_vm5, %v552_v56, -inf  ;;  %v554_v62 = vpop.f32.mrb[6].mxu1 }
 0x19d   : > { %v618_v63 = vadd.f32 %v617_v36, %v605_v52  ;;  %v588_v1 = vmax.f32 %v560_v41, %v564_v58  ;;  %v565_v2 = vsel %vm266_vm2, %v534_v60, -inf  ;;  %v607_v3 = vmul.f32 %v534_v60, %v250_v20  ;;  %v536_v4 = vpop.f32.mrb[7].mxu0  ;;  %v556_v5 = vpop.f32.mrb[7].mxu1 }
 0x19e   : > { %v631_v6 = vadd.f32 %v630_v38, %v606_v59  ;;  %v576_v7 = vmax.f32 %v561_v42, %v565_v2  ;;  %v566_v8 = vsel %vm267_vm3, %v536_v4, -inf  ;;  %v608_v9 = vmul.f32 %v536_v4, %v251_v23 }
 0x19f   : > { %v619_v10 = vadd.f32 %v618_v63, %v607_v3  ;;  %v589_v11 = vmax.f32 %v562_v45, %v566_v8  ;;  %v577_v12 = vmax.f32 %v575_v57, %v567_v39  ;;  %v590_v13 = vmax.f32 %v588_v1, %v568_v43 }
 0x1a0   : > { %v632_v14 = vadd.f32 %v631_v6, %v608_v9  ;;  %v573_v16 = vsel %vm274_vm6, %v554_v62, -inf  ;;  %v578_v17 = vmax.f32 %v576_v7, %v569_v46  ;;  %v614_v21 = vmul.f32 %v552_v56, %v1425_v27 }
 0x1a1   : > { %v620_v18 = vadd.f32 %v619_v10, %v609_v40  ;;  %v579_v19 = vmax.f32 %v577_v12, %v571_v55  ;;  %v592_v20 = vmax.f32 %v590_v13, %v572_v61  ;;  %v574_v23 = vsel %vm275_vm7, %v556_v5, -inf }
 0x1a2   : > { %v633_v22 = vadd.f32 %v632_v14, %v610_v44  ;;  %v580_v25 = vmax.f32 %v578_v17, %v573_v16  ;;  %v591_v26 = vmax.f32 %v589_v11, %v570_v49  ;;  %v615_v34 = vmul.f32 %v554_v62, %v1427_v28 }
 0x1a3   : > { %v621_v30 = vadd.f32 %v620_v18, %v611_v47  ;;  %v616_v38 = vmul.f32 %v556_v5, %v1429_v29  ;;  %v1126_v54 = vmov 1966171168   ;;  %v654_v62 = vshrl.u32 %v276_v0, 7 }
 0x1a4   : > { %v634_v31 = vadd.f32 %v633_v22, %v612_v53  ;;  %v581_v32 = vmax.f32 %v579_v19, %v580_v25  ;;  %v593_v33 = vmax.f32 %v591_v26, %v574_v23  ;;  %v651_v29 = vunpack.c.l.s4 %v1126_v54 }
 0x1a5   : > { %v622_v24 = vadd.f32 %v621_v30, %v613_v15 }
 0x1a6   : > { %v635_v35 = vadd.f32 %v634_v31, %v614_v21  ;;  %v582_v36 = vrot.slane %v581_v32, 4  ;;  %v594_v37 = vmax.f32 %v592_v20, %v593_v33  ;;  %v652_v61 = vunpack.c.0.s8 %v651_v29 }
 0x1a7   : > { %v623_v39 = vadd.f32 %v622_v24, %v615_v34 }
 0x1a8   : > { %v583_v27 = vmax.f32 %v581_v32, %v582_v36  ;;  %v595_v40 = vrot.slane %v594_v37, 4  ;;  %v636_v41 = vadd.f32 %v635_v35, %v616_v38  ;;  %v655_v6 = vsub.s32 %v652_v61, %v654_v62 }
 0x1a9   : > { %v624_v42 = vrot.slane %v623_v39, 4 }
 0x1aa   : > { %v584_v43 = vrot.slane %v583_v27, 2  ;;  %v596_v44 = vmax.f32 %v594_v37, %v595_v40  ;;  %v637_v45 = vrot.slane %v636_v41, 4 }
 0x1ab   : > { %v625_v46 = vadd.f32 %v624_v42, %v623_v39 }
 0x1ac   : > { %v597_v47 = vrot.slane %v596_v44, 2  ;;  %v638_v48 = vadd.f32 %v637_v45, %v636_v41  ;;  %v585_v49 = vmax.f32 %v583_v27, %v584_v43 }
 0x1ad   : > { %v626_v50 = vrot.slane %v625_v46, 2 }
 0x1ae   : > { %v598_v51 = vmax.f32 %v596_v44, %v597_v47  ;;  %v639_v28 = vrot.slane %v638_v48, 2  ;;  %v586_v55 = vrot.slane %v585_v49, 1 }
 0x1af   : > { %v627_v52 = vadd.f32 %v626_v50, %v625_v46 }
 0x1b0   : > { %v640_v53 = vadd.f32 %v639_v28, %v638_v48  ;;  %v599_v57 = vrot.slane %v598_v51, 1  ;;  %v587_v63 = vmax.f32 %v585_v49, %v586_v55 }
 0x1b1   : > { %v628_v56 = vrot.slane %v627_v52, 1 }
 0x1b2   : > { %v641_v58 = vrot.slane %v640_v53, 1  ;;  %v600_v2 = vmax.f32 %v598_v51, %v599_v57 }
 0x1b3   : > { %v629_v59 = vadd.f32 %v628_v56, %v627_v52 }
 0x1b4   : > { %v642_v60 = vadd.f32 %v641_v58, %v640_v53 }
 0x1b5   : > { %v643_v1 = vmul.f32 0.015625, %v629_v59 }
 0x1b6   : > { %v644_v3 = vmul.f32 0.015625, %v642_v60 }
 0x1b7   : > { %v645_v4 = vsub.f32 %v587_v63, %v643_v1 }
 0x1b8   : > { %v646_v5 = vsub.f32 %v600_v2, %v644_v3 }
 0x1ba   : > { %v649_v7 = vcombine.low %v645_v4, %v646_v5 }
 0x1bc   : > { %v656_v8 = vrot.slane %v649_v7, %v655_v6 }
 0x1be   : > { %v663_v9 = vrot.slane %v656_v8, %v655_v6 }
 0x1c0   : > { %669 = vst.msk [vmem:[%s242_s10] sm:$0x3] %vm667_vm8, %v663_v9 }
 0x1c1   : > { %1055 = shalt.err (!%p1052_p6)
}
 0x1c2   : > { %s1056_s25 = scalar_lea.hbm %s1463_s8, 32  ;;  %s1060_s26 = scalar_lea.hbm %s1510_s3, 64 }
 0x1c3   : > { %p1057_p8 = scmp.ne.s32.totalorder %s1463_s8, %s1056_s25  ;;  %p1061_p4 = scmp.lt.u32.totalorder %s1463_s8, %s1510_s3 }
 0x1c4   : > { %p1062_p11 = scmp.lt.u32.totalorder %s1060_s26, %s1056_s25  ;;  %p1064_p3 = scmp.lt.u32.totalorder %s1056_s25, %s1463_s8 }
 0x1c5   : > { %p1058_p10 = pnand %p1057_p8, %p1239_p12 }
 0x1c6   : > { %p1063_p13 = por %p1062_p11, %p1061_p4 }
 0x1c7   : > { %p1059_p0 = pneg %p1058_p10 }
 0x1c8   : > { %p1065_p7 = por %p1064_p3, %p1063_p13 }
 0x1ca   : > { %p1066_p9 = pnand %p1065_p7, %p1059_p0 }
 0x1cc   : > { %1069 = shalt.err (!%p1066_p9)
}
 0x1cd   : > { %890 = dma.vmem_to_hbm [thread:$0]  (%p1239_p12), %s1465_s27, 32, %s1463_s8, %s671_s29  }
 0x1ce PF: > { %s697_s6 = sand.u32 1, %s1104_s12   ;;  %p1525_p1 = scmp.ne.s32.totalorder %s1515_s19, 0 }
 0x1cf   : > { %p1526_p5 = scmp.ge.s32.totalorder %s1116_s15, 2  ;;  %s698_s18 = scalar_lea.sflag [#allocation4], %s697_s6 }
 0x1d1   : > { %p904_p2 = pnand %p1526_p5, %p1525_p1 }
 0x1d3   : > { %1099 = dma.done.wait (!%p904_p2), %s698_s18, 32  }
 0x1d4   : > { %1101 = vsyncadd (!%p904_p2), %s698_s18, 4294967264  ;;  %p19_p6 = scmp.ge.s32.totalorder %s1204_s24, 4   ;;  %s1527_s12 = smov %s1108_s13 }
 0x1d5   : > { %s1528_s13 = smov %s1112_s14  ;;  %s1529_s14 = smov %s1235_s17 }
 0x1d6   : > { %s1530_s15 = smov %s1204_s24  ;;  %21 = sbr.rel (!%p19_p6) target bundleno = 7 (0x7), region = 94 }
 0x1dd   :  { %703 = vsyncpa [#allocation3], 1 }
 0x1de   :  { %705 = vsyncpa [#allocation3 + $0x1], 1 }
 0x1df   :  { %706 = vsyncpa [#allocation6], 1 }
 0x1e0   :  { %708 = vsyncpa [#allocation6 + $0x1], 1 }
 0x1e1   :  { %709 = vsyncpa [#allocation4], 1 }
 0x1e2   :  { %711 = vsyncpa [#allocation4 + $0x1], 1 }

</bundles_post_ra>
